<compile_context>
chip_gen: v5e
topology: v5e:2x2
jax: 0.10.0
libtpu: 0.0.40
codegen_flags: <defaults>
</compile_context>

<pallas_src>
import functools

import jax
import jax.numpy as jnp
from jax.experimental import pallas as pl
from jax.experimental.pallas import tpu as pltpu


def _sublane_multiple(dtype) -> int:
    """Minimum row-tile multiple for sublane packing of this dtype."""
    itemsize = jnp.dtype(dtype).itemsize
    return {4: 8, 2: 16, 1: 32}.get(itemsize, 8)


def _pick_tile_rows(n_rows: int, dim: int, dtype) -> int:
    """Pick a row tile sized by bytes-per-block (~4 MiB) and sublane-aligned."""
    itemsize = jnp.dtype(dtype).itemsize
    sub = _sublane_multiple(dtype)

    # Target ~4 MiB per pipeline block: measured to sit at ~85%+ of HBM
    # roofline while keeping 2x(in)+2x(out) double-buffered blocks (~16 MiB)
    # plus in-kernel f32 temporaries comfortably under the 40 MiB scoped-VMEM
    # limit on every generation (incl. the 64 MiB v7x part).
    target_block_bytes = 4 * 1024 * 1024
    rows = max(target_block_bytes // max(dim * itemsize, 1), sub)
    rows = min(rows, 8192)

    # Ensure the grid has at least 2 steps when there is enough work, so the
    # "parallel" row axis can be split across both TensorCores on v7x.
    if n_rows > sub:
        half = -(-n_rows // 2)                      # ceil(n_rows / 2)
        half = ((half + sub - 1) // sub) * sub      # round up to sublane multiple
        rows = min(rows, half)

    # Never exceed the (sublane-rounded) total row count.
    rows = min(rows, ((n_rows + sub - 1) // sub) * sub)
    # Round down to the sublane multiple.
    rows = max(sub, (rows // sub) * sub)
    return int(rows)


def _rmsnorm_kernel(x_ref, scale_ref, o_ref, *, eps):
    # x_ref:     (tile_rows, dim)
    # scale_ref: (1, dim)      -- broadcast over rows
    # o_ref:     (tile_rows, dim)
    x = x_ref[...].astype(jnp.float32)
    # L2 norm over the last (lane) axis, accumulated in f32.
    sq_sum = jnp.sum(x * x, axis=-1, keepdims=True)                    # (tile_rows, 1)
    norm = jnp.sqrt(sq_sum)                                            # (tile_rows, 1)
    # Per-feature scale times per-row norm, clamped from below by eps.
    rms = jnp.maximum(scale_ref[...].astype(jnp.float32) * norm, eps)  # (tile_rows, dim)
    # Exact divide (memory-bound kernel: this costs nothing in wall-clock and
    # matches the PyTorch reference exactly, unlike the old approx reciprocal).
    o_ref[...] = (x / rms).astype(o_ref.dtype)


def rmsnorm_pallas(x, scale, eps=1e-8, tile_rows=None):
    """x: (..., dim), scale: (dim,) or scalar. Returns array of same shape/dtype as x."""
    dim = x.shape[-1]
    scale = jnp.asarray(scale, dtype=jnp.float32).reshape(-1)
    if scale.shape[0] == 1:
        scale = jnp.broadcast_to(scale, (dim,))
    assert scale.shape == (dim,), f"scale must have shape ({dim},), got {scale.shape}"

    orig_shape = x.shape
    x2d = x.reshape(-1, dim)          # free reshape (collapse leading dims)
    n_rows = x2d.shape[0]

    sub = _sublane_multiple(x.dtype)
    if tile_rows is None:
        tile_rows = _pick_tile_rows(n_rows, dim, x.dtype)
    assert tile_rows % sub == 0, (
        f"tile_rows={tile_rows} must be a multiple of {sub} for dtype {x.dtype}")

    grid = (pl.cdiv(n_rows, tile_rows),)   # ragged final block handled by Pallas
                                           # (compute is row-local; OOB writes masked)

    out = pl.pallas_call(
        functools.partial(_rmsnorm_kernel, eps=eps),
        out_shape=jax.ShapeDtypeStruct((n_rows, dim), x.dtype),
        grid_spec=pltpu.PrefetchScalarGridSpec(
            num_scalar_prefetch=0,
            grid=grid,
            in_specs=[
                pl.BlockSpec((tile_rows, dim), lambda i: (i, 0)),
                pl.BlockSpec((1, dim), lambda i: (0, 0)),
            ],
            out_specs=pl.BlockSpec((tile_rows, dim), lambda i: (i, 0)),
        ),
        compiler_params=pltpu.CompilerParams(
            dimension_semantics=("parallel",),
            vmem_limit_bytes=40 * 1024 * 1024,
        ),
    )(x2d, scale.reshape(1, dim))

    return out.reshape(orig_shape)


def rmsnorm_ref(x, scale, eps=1e-8):
    """Pure-JAX reference matching the PyTorch forward exactly."""
    norm = jnp.sqrt(jnp.sum(x.astype(jnp.float32) ** 2, axis=-1, keepdims=True))
    rms = jnp.maximum(jnp.asarray(scale, jnp.float32) * norm, eps)
    return (x.astype(jnp.float32) / rms).astype(x.dtype)


if __name__ == "__main__":
    key = jax.random.PRNGKey(0)

    # Main case: matches the nn.Module usage (batch=2, seq=8, hidden=32).
    batch, seq, dim = 2, 8, 32
    x = jax.random.normal(key, (batch, seq, dim), dtype=jnp.float32)
    # Deterministic parameter init, matching nn.Parameter(torch.ones(dim) * dim**-0.5).
    scale = jnp.ones((dim,), dtype=jnp.float32) * (dim ** -0.5)

    out = jax.block_until_ready(rmsnorm_pallas(x, scale, eps=1e-8))
    ref = rmsnorm_ref(x, scale, eps=1e-8)
    assert out.shape == x.shape and out.dtype == x.dtype
    # Exact divide in-kernel -> tight tolerance.
    assert jnp.allclose(out, ref, atol=1e-5, rtol=1e-5), "mismatch vs reference"

    # Ragged-rows case (row count not a multiple of the tile) to exercise the
    # masked final block.
    x2 = jax.random.normal(jax.random.PRNGKey(1), (15, dim), dtype=jnp.float32)
    out2 = jax.block_until_ready(rmsnorm_pallas(x2, scale, eps=1e-8, tile_rows=8))
    ref2 = rmsnorm_ref(x2, scale, eps=1e-8)
    assert jnp.allclose(out2, ref2, atol=1e-5, rtol=1e-5), "ragged-row mismatch"

    # Scalar-scale case (weight_scaling=False path of the module).
    x3 = jax.random.normal(jax.random.PRNGKey(2), (3, 5, dim), dtype=jnp.float32)
    out3 = jax.block_until_ready(rmsnorm_pallas(x3, dim ** -0.5, eps=1e-8))
    ref3 = rmsnorm_ref(x3, dim ** -0.5, eps=1e-8)
    assert jnp.allclose(out3, ref3, atol=1e-5, rtol=1e-5), "scalar-scale mismatch"

    print("KERNEL_OK")
</pallas_src>

<mosaic_0001>
module attributes {stable_mosaic.version = 11 : i64} {
  func.func @_rmsnorm_kernel(%arg0: i32, %arg1: memref<8x32xf32, #tpu.memory_space<vmem>>, %arg2: memref<1x32xf32, #tpu.memory_space<vmem>>, %arg3: memref<8x32xf32, #tpu.memory_space<vmem>>) attributes {dimension_semantics = [#tpu.dimension_semantics<parallel>], iteration_bounds = array<i64: 2>, scalar_prefetch = 0 : i64, scratch_operands = 0 : i64, tpu.core_type = #tpu.core_type<tc>, window_params = [{transform_indices = @transform_0, window_bounds = array<i64: 8, 32>}, {pipeline_mode = #tpu.pipeline_mode<synchronous>, transform_indices = @transform_1, window_bounds = array<i64: 1, 32>}, {transform_indices = @transform_2, window_bounds = array<i64: 8, 32>}]} {
    %c0 = arith.constant 0 : index
    %c0_0 = arith.constant 0 : index
    %0 = vector.load %arg1[%c0, %c0_0] : memref<8x32xf32, #tpu.memory_space<vmem>>, vector<8x32xf32>
    %1 = arith.mulf %0, %0 : vector<8x32xf32>
    %cst = arith.constant dense<0.000000e+00> : vector<8xf32>
    %2 = vector.multi_reduction <add>, %1, %cst [1] : vector<8x32xf32> to vector<8xf32>
    %3 = vector.shape_cast %2 : vector<8xf32> to vector<8x1xf32>
    %4 = math.sqrt %3 : vector<8x1xf32>
    %c0_1 = arith.constant 0 : index
    %c0_2 = arith.constant 0 : index
    %5 = vector.load %arg2[%c0_1, %c0_2] : memref<1x32xf32, #tpu.memory_space<vmem>>, vector<1x32xf32>
    %6 = vector.broadcast %5 : vector<1x32xf32> to vector<8x32xf32>
    %7 = vector.broadcast %4 : vector<8x1xf32> to vector<8x32xf32>
    %8 = arith.mulf %6, %7 : vector<8x32xf32>
    %cst_3 = arith.constant 9.99999993E-9 : f32
    %9 = vector.broadcast %cst_3 : f32 to vector<8x32xf32>
    %10 = arith.maximumf %8, %9 : vector<8x32xf32>
    %11 = arith.divf %0, %10 : vector<8x32xf32>
    %c0_4 = arith.constant 0 : index
    %c0_5 = arith.constant 0 : index
    %12 = vector.load %arg3[%c0_4, %c0_5] : memref<8x32xf32, #tpu.memory_space<vmem>>, vector<8x32xf32>
    tpu.vector_store %arg3[%c0_4, %c0_5], %11 {strides = array<i32>} : memref<8x32xf32, #tpu.memory_space<vmem>>, vector<8x32xf32>,
    return
  }
  func.func @transform_0(%arg0: i32) -> (i32, i32) {
    %c0_i32 = arith.constant 0 : i32
    %c0_i32_0 = arith.constant 0 : i32
    return %arg0, %c0_i32 : i32, i32
  }
  func.func @transform_1(%arg0: i32) -> (i32, i32) {
    %c0_i32 = arith.constant 0 : i32
    %c0_i32_0 = arith.constant 0 : i32
    %c0_i32_1 = arith.constant 0 : i32
    return %c0_i32, %c0_i32_0 : i32, i32
  }
  func.func @transform_2(%arg0: i32) -> (i32, i32) {
    %c0_i32 = arith.constant 0 : i32
    %c0_i32_0 = arith.constant 0 : i32
    return %arg0, %c0_i32 : i32, i32
  }
}

</mosaic_0001>

<bundles_post_ra>
// kernel: tpu_custom_call.1
= control target key start
LH: loop header
LB: loop body
LE: loop exit
PB: predicated region body
PF: predicated region fallthrough
CT: control target
= control target key end

     0   :  { %7 = vsyncpa [#allocation3], 0  ;;  %s680_s0 = inlined_call_operand.hbm [shape: f32[16,32], index: 0, kind: input, shape index: {}]   ;;  %s681_s1 = inlined_call_operand.hbm [shape: f32[1,32], index: 1, kind: input, shape index: {}]   ;;  %s682_s2 = inlined_call_operand.hbm [shape: f32[16,32], index: 2, kind: output, shape index: {}]  }
   0x1   :  { %9 = vsyncpa [#allocation3 + $0x1], 0 }
   0x2   :  { %10 = vsyncpa [#allocation6], 0 }
   0x3   :  { %11 = vsyncpa [#allocation4], 0 }
   0x4   :  { %13 = vsyncpa [#allocation4 + $0x1], 0  ;;  %s536_s9 = smov 0   ;;  %s538_s10 = smov 0  }
   0x5   :  { %s540_s11 = smov 0   ;;  %s542_s12 = smov 0  }
   0x6 LB: > { %s557_s13 = sadd.s32 4294967295, %s518_s12   ;;  %s312_s14 = sadd.s32 4294967294, %s518_s12   ;;  %s518_s12 = sphi %s542_s12, %s692_s12   ;;  %s514_s11 = sphi %s540_s11, %s691_s11   ;;  %s510_s10 = sphi %s538_s10, %s690_s10   ;;  %s506_s9 = sphi %s536_s9, %s689_s9  }
   0x7   : > { %p39_p0 = scmp.ne.s32.totalorder %s510_s10, %s506_s9  ;;  %p40_p1 = scmp.eq.s32.totalorder %s557_s13, 0 }
   0x8   : > { %p84_p2 = scmp.eq.s32.totalorder %s557_s13, 1  ;;  %p90_p3 = scmp.eq.s32.totalorder %s312_s14, 1 }
   0x9   : > { %p566_p4 = por %p40_p1, %p39_p0  ;;  %p313_p5 = scmp.ge.s32.totalorder %s518_s12, 1 }
   0xa   : > { %p571_p6 = por %p90_p3, %p39_p0  ;;  %p97_p7 = scmp.lt.s32.totalorder %s518_s12, 3 }
   0xb   : > { %s109_s19 = sshll.u32 %s681_s1, 4  ;;  %s520_s21 = smov [#allocation5]   ;;  %s110_s19 = int_to_ptr.hbm [resolvable:$true] %s109_s19 }
   0xc   : > { %p579_p8 = pnand %p313_p5, %p97_p7  ;;  %s111_s22 = sshll.u32 %s520_s21, 4  ;;  %s112_s22 = int_to_ptr.vmem [resolvable:$true] %s111_s22 }
   0xd   : > { %s589_s23 = sadd.s32 1, %s518_s12   ;;  %s26_s24 = sadd.s32 1, %s514_s11 }
   0xe   : > { %p334_p10 = pneg %p579_p8  ;;  %s23_s25 = ssub.s32 %s518_s12, %s589_s23 }
   0xf   : > { %p24_p12 = scmp.eq.s32.totalorder %s23_s25, 0  ;;  %p33_p13 = scmp.ne.s32.totalorder %s514_s11, %s510_s10 }
  0x10   : > { %p335_p11 = pnand %p334_p10, %p40_p1  ;;  %p34_p0 = scmp.eq.s32.totalorder %s518_s12, 0 }
  0x11   : > { %s598_s26 = scalar_select %p24_p12, %s514_s11, %s26_s24  }
  0x12   : > { %337 = dma.hbm_to_vmem [thread:$0]  (!%p335_p11), %s110_s19, 16, %s112_s22, [#allocation6]  }
  0x13   : > { %p602_p3 = por %p84_p2, %p33_p13  ;;  %p347_p5 = scmp.lt.s32.totalorder %s518_s12, 2 }
  0x14   : > { %s122_s28 = sand.u32 1, %s514_s11   ;;  %s317_s29 = sshll.u32 %s518_s12, 3 }
  0x15   : > { %p35_p7 = por %p34_p0, %p33_p13  ;;  %s316_s30 = sshll.u32 %s122_s28, 3 }
  0x16   : > { %s130_s5 = scalar_lea.hbm %s680_s0, %s317_s29  ;;  %s126_s7 = scalar_lea.vmem [#allocation2], %s316_s30 }
  0x17   : > { %s132_s6 = sshll.u32 %s130_s5, 4  ;;  %s134_s8 = sshll.u32 %s126_s7, 4  ;;  %s133_s6 = int_to_ptr.hbm [resolvable:$true] %s132_s6  ;;  %s135_s8 = int_to_ptr.vmem [resolvable:$true] %s134_s8 }
  0x18   : > { %p612_p10 = pnand %p347_p5, %p35_p7  ;;  %s123_s17 = scalar_lea.sflag [#allocation3], %s122_s28 }
  0x19   : > { %s418_s18 = sshra.s32 %s133_s6, 4  ;;  %s425_s24 = scalar_lea.hbm %s680_s0, 16  ;;  %s419_s18 = int_to_ptr.hbm [resolvable:$true] %s418_s18 }
  0x1a   : > { %s420_s19 = scalar_lea.hbm %s419_s18, 8  ;;  %p422_p11 = pneg %p612_p10 }
  0x1b   : > { %p421_p2 = scmp.ne.s32.totalorder %s419_s18, %s420_s19  ;;  %p426_p0 = scmp.lt.s32.totalorder %s419_s18, %s680_s0 }
  0x1c   : > { %p427_p5 = scmp.lt.s32.totalorder %s425_s24, %s420_s19 }
  0x1d   : > { %p423_p12 = pnand %p422_p11, %p421_p2 }
  0x1e   : > { %p428_p7 = por %p427_p5, %p426_p0 }
  0x1f   : > { %p424_p13 = pneg %p423_p12 }
  0x21   : > { %p429_p9 = pnand %p428_p7, %p424_p13 }
  0x23   : > { %432 = shalt.err (!%p429_p9)
}
  0x24   : > { %341 = dma.hbm_to_vmem [thread:$0]  (!%p612_p10), %s133_s6, 128, %s135_s8, %s123_s17  }
  0x25   : > { %143 = sbr.rel (%p579_p8) target bundleno = 212 (0xd4), region = 28  ;;  %s629_s28 = sand.u32 (!%p579_p8), 1, %s510_s10  }
  0x26   : > { %s319_s30 = sshll.u32 (!%p579_p8), %s629_s28, 3  ;;  %s146_s3 = scalar_lea.sflag (!%p579_p8), [#allocation3], %s629_s28 }
  0x27   : > { %s149_s4 = scalar_lea.vmem (!%p579_p8), [#allocation2], %s319_s30 }
  0x2a   : > { %493 = dma.done.wait (%p566_p4), %s146_s3, 128  }
  0x2b   : > { %495 = vsyncadd (%p566_p4), %s146_s3, 4294967168 }
  0x2c   : > { %497 = dma.done.wait (%p40_p1), [#allocation6], 16  }
  0x2d   : > { %499 = vsyncadd (%p40_p1), [#allocation6], 4294967280  ;;  %v176_v0 = vld [vmem:[%s149_s4] sm:$0xff]  ;;  %vm178_vm0 = vcmask 261120   ;;  %v383_v11 = vld [vmem:[#allocation5] ss:$0 sm:$0xff] }
  0x2e   : > { %v177_v1 = vmul.f32 %v176_v0, %v176_v0  ;;  %s323_s15 = sshll.u32 %s557_s13, 3  ;;  %s175_s7 = scalar_lea.vmem [#allocation7], %s319_s30 }
  0x2f   : > { %s227_s6 = scalar_lea.hbm %s682_s2, %s323_s15  ;;  %s229_s8 = sshll.u32 %s175_s7, 4  ;;  %s230_s8 = int_to_ptr.vmem [resolvable:$true] %s229_s8 }
  0x30   : > { %v179_v2 = vsel %vm178_vm0, %v177_v1, 0.0  ;;  %s231_s14 = sshll.u32 %s227_s6, 4  ;;  %s217_s13 = scalar_lea.sflag [#allocation4], %s629_s28  ;;  %s232_s14 = int_to_ptr.hbm [resolvable:$true] %s231_s14 }
  0x31   : > { %180 = vadd.xlane.f32.xlu0 %v179_v2  ;;  %s462_s17 = sshra.s32 %s232_s14, 4  ;;  %s468_s22 = scalar_lea.hbm %s682_s2, 16  ;;  %s463_s17 = int_to_ptr.hbm [resolvable:$true] %s462_s17 }
  0x32   : > { %s464_s18 = scalar_lea.hbm %s463_s17, 8  ;;  %p469_p9 = scmp.lt.s32.totalorder %s463_s17, %s682_s2 }
  0x33   : > { %p465_p1 = scmp.ne.s32.totalorder %s463_s17, %s464_s18  ;;  %p470_p10 = scmp.lt.s32.totalorder %s468_s22, %s464_s18 }
  0x35   : > { %p466_p4 = pnand %p465_p1, %p602_p3  ;;  %p471_p2 = por %p470_p10, %p469_p9 }
  0x37   : > { %p467_p8 = pneg %p466_p4 }
  0x39   : > { %p472_p11 = pnand %p471_p2, %p467_p8 }
  0xa4   : > { %v181_v3 = vpop.xlane.xlu0 %180 }
  0xa5   : > { %384 = vrsqrt.f32 %v181_v3  ;;  %vm189_vm1 = vcmp.eq.f32.partialorder %v181_v3, inf  ;;  %v192_v12 = vand.u32 2147483648, %v181_v3  ;;  %vm191_vm2 = vcmp.eq.f32.partialorder %v181_v3, 0.0 }
  0xab   : > { %v385_v4 = vpop.eup %384 }
  0xac   : > { %v183_v5 = vmul.f32 %v385_v4, %v181_v3 }
  0xae   : > { %v184_v6 = vmul.f32 %v385_v4, %v183_v5 }
  0xb0   : > { %v185_v7 = vmul.f32 0.5, %v184_v6 }
  0xb2   : > { %v186_v8 = vsub.f32 1.5, %v185_v7 }
  0xb4   : > { %v187_v9 = vmul.f32 %v385_v4, %v186_v8 }
  0xb6   : > { %v188_v10 = vmul.f32 %v187_v9, %v181_v3 }
  0xb8   : > { %v190_v13 = vsel %vm189_vm1, %v181_v3, %v188_v10 }
  0xb9   : > { %v193_v14 = vsel %vm191_vm2, %v192_v12, %v190_v13 }
  0xba   : > { %v198_v15 = vmul.f32 %v383_v11, %v193_v14 }
  0xbc   : > { %v199_v16 = vmax.f32 %v198_v15, 1e-08 }
  0xbe   : > { %386 = vrcp.f32 %v199_v16  ;;  %v211_v20 = vand.u32 2147483648, %v199_v16  ;;  %v209_v22 = vand.u32 2147483647, %v199_v16  ;;  %vm205_vm4 = vweird.f32 %v199_v16 }
  0xc0   : > { %v212_v24 = vor.u32 1.1754944e-38, %v211_v20  ;;  %vm210_vm6 = vcmp.eq.f32.partialorder %v209_v22, 8.507059e+37 }
  0xc4   : > { %v387_v17 = vpop.eup %386 }
  0xc5   : > { %v201_v18 = vmul.f32 %v387_v17, %v199_v16  ;;  %vm206_vm3 = vweird.f32 %v387_v17 }
  0xc6   : > { %vm207_vm5 = vmor %vm205_vm4, %vm206_vm3 }
  0xc7   : > { %v202_v19 = vsub.f32 1.0, %v201_v18 }
  0xc9   : > { %v203_v21 = vmul.f32 %v387_v17, %v202_v19 }
  0xcb   : > { %v204_v23 = vadd.f32 %v387_v17, %v203_v21 }
  0xcd   : > { %v208_v25 = vsel %vm207_vm5, %v387_v17, %v204_v23 }
  0xce   : > { %v213_v26 = vsel %vm210_vm6, %v212_v24, %v208_v25 }
  0xcf   : > { %v214_v27 = vmul.f32 %v213_v26, %v176_v0 }
  0xd1   : > { %215 = vst.msk [vmem:[%s175_s7] sm:$0xff] %vm178_vm0, %v214_v27 }
  0xd2   : > { %475 = shalt.err (!%p472_p11)
}
  0xd3   : > { %332 = dma.vmem_to_hbm [thread:$0]  (%p602_p3), %s230_s8, 128, %s232_s14, %s217_s13  }
  0xd4 PF: > { %s243_s29 = sand.u32 1, %s506_s9   ;;  %p688_p12 = scmp.ge.s32.totalorder %s518_s12, 2 }
  0xd5   : > { %s244_s28 = scalar_lea.sflag [#allocation4], %s243_s29 }
  0xd6   : > { %p343_p13 = pnand %p688_p12, %p571_p6 }
  0xd8   : > { %p344_p0 = pneg %p343_p13 }
  0xda   : > { %501 = dma.done.wait (%p344_p0), %s244_s28, 128  }
  0xdb   : > { %503 = vsyncadd (%p344_p0), %s244_s28, 4294967168  ;;  %p16_p5 = scmp.ge.s32.totalorder %s589_s23, 4   ;;  %s689_s9 = smov %s510_s10 }
  0xdc   : > { %s690_s10 = smov %s514_s11  ;;  %s691_s11 = smov %s598_s26 }
  0xdd   : > { %s692_s12 = smov %s589_s23  ;;  %18 = sbr.rel (!%p16_p5) target bundleno = 6 (0x6), region = 77 }
  0xe2   :  { %250 = vsyncpa [#allocation3], 1 }
  0xe3   :  { %252 = vsyncpa [#allocation3 + $0x1], 1 }
  0xe4   :  { %253 = vsyncpa [#allocation6], 1 }
  0xe5   :  { %254 = vsyncpa [#allocation4], 1 }
  0xe6   :  { %256 = vsyncpa [#allocation4 + $0x1], 1 }

</bundles_post_ra>
